<compile_context>
chip_gen: v7x
topology: tpu7x:2x2x1
jax: 0.10.0
libtpu: 0.0.40
codegen_flags: <defaults>
</compile_context>

<pallas_src>
import jax
import jax.numpy as jnp
from jax import lax
from jax.experimental import pallas as pl
from jax.experimental.pallas import tpu as pltpu


def _make_lstm_kernel(H, k, unroll):
    """Builds the serial-recurrence kernel for static sizes (H, pack k, unroll).

    Gate lane layout is (i, f, o, g) -- permuted outside the kernel.
    """

    def kernel(gx_ref, whh_ref, h_out_ref, h_sc, c_sc):
        # gx_ref   : (TT, Bt, 4H)     bf16  x@W_ih^T + b  (time-major chunk)
        # whh_ref  : (H, 4H)          bf16  recurrent weight (transposed)
        # h_out_ref: (TT//k, Bt, k*H) f32   lane-dense packed hidden states
        # h_sc/c_sc: (Bt, H)          f32   state carried across time chunks
        @pl.when(pl.program_id(1) == 0)
        def _():
            h_sc[...] = jnp.zeros_like(h_sc)
            c_sc[...] = jnp.zeros_like(c_sc)

        whh = whh_ref[...]                       # hoisted out of the loop (bf16)
        TT = gx_ref.shape[0]

        def macro_step(mt, carry):
            h, c = carry                         # f32 state, lives in registers
            outs = []
            for j in range(k):                   # static inner unroll: packs k
                t = mt * k + j                   # timesteps -> one 128-lane tile
                # Only the truly serial matmul is on the critical path:
                # (Bt, H)bf16 @ (H, 4H)bf16 -> f32.
                gates = gx_ref[t].astype(jnp.float32) + jnp.dot(
                    h.astype(jnp.bfloat16), whh,
                    preferred_element_type=jnp.float32)
                sig = jax.nn.sigmoid(gates[:, :3 * H])   # i, f, o in one pass
                i_g = sig[:, 0 * H:1 * H]
                f_g = sig[:, 1 * H:2 * H]
                o_g = sig[:, 2 * H:3 * H]
                g_g = jnp.tanh(gates[:, 3 * H:4 * H])
                c = f_g * c + i_g * g_g
                h = o_g * jnp.tanh(c)
                outs.append(h)
            packed = outs[0] if k == 1 else jnp.concatenate(outs, axis=-1)
            h_out_ref[mt] = packed.astype(h_out_ref.dtype)   # lane-dense store
            return (h, c)

        h_fin, c_fin = lax.fori_loop(0, TT // k, macro_step,
                                     (h_sc[...], c_sc[...]), unroll=unroll)
        h_sc[...] = h_fin
        c_sc[...] = c_fin

    return kernel


def bidirectional_lstm_forward(x, params, *, time_chunk=32):
    """x: (B, T, nIn) float32 -> (B, T, nOut) float32."""
    w_ih, w_hh, b_ih, b_hh, w_emb, b_emb = (
        params["w_ih"], params["w_hh"], params["b_ih"], params["b_hh"],
        params["w_emb"], params["b_emb"])

    B, T, nIn = x.shape
    H = w_hh.shape[1]          # w_hh: (4H, H)
    nOut = w_emb.shape[0]      # w_emb: (nOut, H)

    # ---- gate reorder (i,f,g,o) -> (i,f,o,g): done once on the weights ------
    perm = jnp.concatenate([jnp.arange(0, 2 * H),
                            jnp.arange(3 * H, 4 * H),
                            jnp.arange(2 * H, 3 * H)])
    w_ih_p = w_ih[perm]
    whh_t = jnp.transpose(w_hh[perm]).astype(jnp.bfloat16)   # (H, 4H) bf16
    b_p = (b_ih + b_hh)[perm]

    # ---- hoisted input projection, computed time-major directly -------------
    # (transpose the nIn-wide x, not the 4H-wide gates tensor)
    x_tm = jnp.transpose(x, (1, 0, 2))                        # (T, B, nIn)
    gx_tm = (x_tm.reshape(T * B, nIn) @ w_ih_p.T + b_p
             ).astype(jnp.bfloat16).reshape(T, B, 4 * H)

    # ---- lane packing so the per-step h store is 128-lane dense -------------
    k = (128 // H) if (H < 128 and 128 % H == 0) else 1

    # ---- batch tiling: 2 tiles when big enough (v7x: one per TensorCore) ----
    n_btiles = 1 if B <= 8 else 2
    Bt = ((-(-B // n_btiles)) + 7) // 8 * 8
    Bp = Bt * n_btiles

    TT = max(k, (min(time_chunk, T) // k) * k)   # time chunk, multiple of k
    T_pad = pl.cdiv(T, TT) * TT

    if T_pad != T or Bp != B:
        gx_tm = jnp.pad(gx_tm, ((0, T_pad - T), (0, Bp - B), (0, 0)))

    # ---- vreg-pressure-aware unroll of the in-kernel time loop --------------
    gate_vregs = max(1.0, Bt * 4 * H / 1024.0)   # f32 gates vregs per timestep
    unroll = int(max(1, min(8, 24 // (gate_vregs * k))))
    unroll = min(unroll, max(1, TT // k))

    kernel = _make_lstm_kernel(H, k, unroll)

    # ---- explicit scoped-VMEM budget (v5e default 16 MiB; v7x 64 MiB phys) --
    gx_blk = TT * Bt * 4 * H * 2                  # bf16, double-buffered
    out_blk = (TT // k) * Bt * k * H * 4          # f32,  double-buffered
    whh_blk = H * 4 * H * 2                       # bf16, double-buffered
    scratch = 2 * Bt * H * 4
    vmem_need = 2 * (gx_blk + out_blk + whh_blk) + scratch
    vmem_limit = int(min(max(2 * vmem_need, 16 << 20), 96 << 20))

    h_pk = pl.pallas_call(
        kernel,
        out_shape=jax.ShapeDtypeStruct((T_pad // k, Bp, k * H), jnp.float32),
        grid_spec=pltpu.PrefetchScalarGridSpec(
            num_scalar_prefetch=0,
            grid=(Bp // Bt, T_pad // TT),          # (batch tiles, time chunks)
            in_specs=[
                pl.BlockSpec((TT, Bt, 4 * H), lambda bi, ti: (ti, bi, 0)),
                pl.BlockSpec((H, 4 * H), lambda bi, ti: (0, 0)),
            ],
            out_specs=pl.BlockSpec((TT // k, Bt, k * H),
                                   lambda bi, ti: (ti, bi, 0)),
            scratch_shapes=[
                pltpu.VMEM((Bt, H), jnp.float32),   # h state
                pltpu.VMEM((Bt, H), jnp.float32),   # c state
            ],
        ),
        compiler_params=pltpu.CompilerParams(
            # batch tiles are independent -> parallel; the time-chunk axis
            # carries h/c state -> strictly sequential.
            dimension_semantics=("parallel", "arbitrary"),
            vmem_limit_bytes=vmem_limit),
    )(gx_tm, whh_t)

    # ---- hoisted output projection on the packed layout (H is last dim); ----
    # only the small nOut-wide result is transposed back to batch-major.
    # TODO(synk): nn.Dropout(p=0.5) is stochastic in training mode; treated as
    # identity (PyTorch eval behaviour).
    out_flat = h_pk.reshape(-1, H) @ w_emb.T + b_emb          # (T'/k*Bp*k, nOut)
    out_tm = out_flat.reshape(T_pad // k, Bp, k, nOut)
    out = jnp.transpose(out_tm, (1, 0, 2, 3)).reshape(Bp, T_pad, nOut)
    return out[:B, :T]


def _reference_forward(x, params):
    """Pure-JAX f32 reference of the PyTorch forward (for correctness)."""
    w_ih, w_hh, b_ih, b_hh, w_emb, b_emb = (
        params["w_ih"], params["w_hh"], params["b_ih"], params["b_hh"],
        params["w_emb"], params["b_emb"])
    B, T, _ = x.shape
    H = w_hh.shape[1]

    def step(carry, x_t):
        h, c = carry
        gates = x_t @ w_ih.T + h @ w_hh.T + b_ih + b_hh
        i = jax.nn.sigmoid(gates[:, 0 * H:1 * H])
        f = jax.nn.sigmoid(gates[:, 1 * H:2 * H])
        g = jnp.tanh(gates[:, 2 * H:3 * H])
        o = jax.nn.sigmoid(gates[:, 3 * H:4 * H])
        c = f * c + i * g
        h = o * jnp.tanh(c)
        return (h, c), h

    h0 = jnp.zeros((B, H), jnp.float32)
    c0 = jnp.zeros((B, H), jnp.float32)
    _, hs = jax.lax.scan(step, (h0, c0), jnp.transpose(x, (1, 0, 2)))
    rec = jnp.transpose(hs, (1, 0, 2))                    # (B, T, H)
    out = rec.reshape(B * T, H) @ w_emb.T + b_emb
    return out.reshape(B, T, -1)


def init_params(key, nIn, nHidden, nOut):
    """Deterministic init mimicking PyTorch's uniform(-1/sqrt(H), 1/sqrt(H))."""
    ks = jax.random.split(key, 6)
    k_lstm = 1.0 / jnp.sqrt(nHidden)
    k_lin = 1.0 / jnp.sqrt(nHidden)
    u = lambda k, shp, s: jax.random.uniform(k, shp, jnp.float32, -s, s)
    return {
        "w_ih": u(ks[0], (4 * nHidden, nIn), k_lstm),
        "w_hh": u(ks[1], (4 * nHidden, nHidden), k_lstm),
        "b_ih": u(ks[2], (4 * nHidden,), k_lstm),
        "b_hh": u(ks[3], (4 * nHidden,), k_lstm),
        "w_emb": u(ks[4], (nOut, nHidden), k_lin),
        "b_emb": u(ks[5], (nOut,), k_lin),
    }


if __name__ == "__main__":
    B, T, nIn, nHidden, nOut = 2, 8, 16, 32, 16

    key = jax.random.PRNGKey(0)
    k_x, k_p = jax.random.split(key)
    x = jax.random.normal(k_x, (B, T, nIn), jnp.float32)
    params = init_params(k_p, nIn, nHidden, nOut)

    fwd = jax.jit(bidirectional_lstm_forward)
    out = jax.block_until_ready(fwd(x, params))

    ref = _reference_forward(x, params)
    assert out.shape == (B, T, nOut)
    # bf16 recurrent path -> tolerance loosened vs. the f32 reference.
    max_err = float(jnp.max(jnp.abs(out - ref)))
    assert jnp.allclose(out, ref, atol=3e-2, rtol=3e-2), (
        f"mismatch vs reference, max abs err={max_err}")

    print("KERNEL_OK")
</pallas_src>

<mosaic_0001>
module attributes {stable_mosaic.version = 11 : i64} {
  func.func @kernel(%arg0: i32, %arg1: i32, %arg2: memref<8x8x128xbf16, #tpu.memory_space<vmem>>, %arg3: memref<32x128xbf16, #tpu.memory_space<vmem>>, %arg4: memref<2x8x128xf32, #tpu.memory_space<vmem>>, %arg5: memref<8x32xf32, #tpu.memory_space<vmem>>, %arg6: memref<8x32xf32, #tpu.memory_space<vmem>>) attributes {dimension_semantics = [#tpu.dimension_semantics<parallel>, #tpu.dimension_semantics<arbitrary>], iteration_bounds = array<i64: 1, 1>, scalar_prefetch = 0 : i64, scratch_operands = 2 : i64, tpu.core_type = #tpu.core_type<tc>, window_params = [{transform_indices = @transform_0, window_bounds = array<i64: 8, 8, 128>}, {pipeline_mode = #tpu.pipeline_mode<synchronous>, transform_indices = @transform_1, window_bounds = array<i64: 32, 128>}, {transform_indices = @transform_2, window_bounds = array<i64: 2, 8, 128>}]} {
    %c0_i32 = arith.constant 0 : i32
    %0 = arith.cmpi eq, %arg1, %c0_i32 : i32
    %1 = arith.extui %0 : i1 to i32
    %c0_i32_0 = arith.constant 0 : i32
    %2 = arith.cmpi ne, %1, %c0_i32_0 : i32
    scf.if %2 {
      %cst_60 = arith.constant 0.000000e+00 : f32
      %218 = vector.broadcast %cst_60 : f32 to vector<8x32xf32>
      %c0_61 = arith.constant 0 : index
      %c0_62 = arith.constant 0 : index
      %219 = vector.load %arg5[%c0_61, %c0_62] : memref<8x32xf32, #tpu.memory_space<vmem>>, vector<8x32xf32>
      tpu.vector_store %arg5[%c0_61, %c0_62], %218 {strides = array<i32>} : memref<8x32xf32, #tpu.memory_space<vmem>>, vector<8x32xf32>,
      %cst_63 = arith.constant 0.000000e+00 : f32
      %220 = vector.broadcast %cst_63 : f32 to vector<8x32xf32>
      %c0_64 = arith.constant 0 : index
      %c0_65 = arith.constant 0 : index
      %221 = vector.load %arg6[%c0_64, %c0_65] : memref<8x32xf32, #tpu.memory_space<vmem>>, vector<8x32xf32>
      tpu.vector_store %arg6[%c0_64, %c0_65], %220 {strides = array<i32>} : memref<8x32xf32, #tpu.memory_space<vmem>>, vector<8x32xf32>,
    } else {
    }
    %c0 = arith.constant 0 : index
    %c0_1 = arith.constant 0 : index
    %3 = vector.load %arg3[%c0, %c0_1] : memref<32x128xbf16, #tpu.memory_space<vmem>>, vector<32x128xbf16>
    %c0_2 = arith.constant 0 : index
    %c0_3 = arith.constant 0 : index
    %4 = vector.load %arg5[%c0_2, %c0_3] : memref<8x32xf32, #tpu.memory_space<vmem>>, vector<8x32xf32>
    %c0_4 = arith.constant 0 : index
    %c0_5 = arith.constant 0 : index
    %5 = vector.load %arg6[%c0_4, %c0_5] : memref<8x32xf32, #tpu.memory_space<vmem>>, vector<8x32xf32>
    %c0_i32_6 = arith.constant 0 : i32
    %c4_i32 = arith.constant 4 : i32
    %6 = arith.muli %c0_i32_6, %c4_i32 : i32
    %c0_i32_7 = arith.constant 0 : i32
    %7 = arith.addi %6, %c0_i32_7 : i32
    %8 = arith.index_cast %7 : i32 to index
    %c0_8 = arith.constant 0 : index
    %c0_9 = arith.constant 0 : index
    %9 = vector.load %arg2[%8, %c0_8, %c0_9] : memref<8x8x128xbf16, #tpu.memory_space<vmem>>, vector<1x8x128xbf16>
    %10 = vector.shape_cast %9 : vector<1x8x128xbf16> to vector<8x128xbf16>
    %11 = arith.extf %10 : vector<8x128xbf16> to vector<8x128xf32>
    %12 = arith.truncf %4 : vector<8x32xf32> to vector<8x32xbf16>
    %cst = arith.constant dense<0.000000e+00> : vector<8x128xf32>
    %13 = tpu.matmul %12, %3, %cst {dimension_numbers = #tpu.dot_dimension_numbers<[1], [0], [0], [1], [0, 0, 1, 1], [], []>} : vector<8x32xbf16>, vector<32x128xbf16>, vector<8x128xf32> -> vector<8x128xf32>
    %14 = arith.addf %11, %13 : vector<8x128xf32>
    %15 = vector.extract_strided_slice %14 {offsets = [0, 0], sizes = [8, 96], strides = [1, 1]} : vector<8x128xf32> to vector<8x96xf32>
    %16 = arith.negf %15 : vector<8x96xf32>
    %17 = math.exp %16 : vector<8x96xf32>
    %cst_10 = arith.constant 1.000000e+00 : f32
    %18 = vector.broadcast %cst_10 : f32 to vector<8x96xf32>
    %19 = arith.addf %18, %17 : vector<8x96xf32>
    %20 = arith.divf %18, %19 : vector<8x96xf32>
    %21 = vector.extract_strided_slice %20 {offsets = [0, 0], sizes = [8, 32], strides = [1, 1]} : vector<8x96xf32> to vector<8x32xf32>
    %22 = vector.extract_strided_slice %20 {offsets = [0, 32], sizes = [8, 32], strides = [1, 1]} : vector<8x96xf32> to vector<8x32xf32>
    %23 = vector.extract_strided_slice %20 {offsets = [0, 64], sizes = [8, 32], strides = [1, 1]} : vector<8x96xf32> to vector<8x32xf32>
    %24 = vector.extract_strided_slice %14 {offsets = [0, 96], sizes = [8, 32], strides = [1, 1]} : vector<8x128xf32> to vector<8x32xf32>
    %25 = math.tanh %24 : vector<8x32xf32>
    %26 = arith.mulf %22, %5 : vector<8x32xf32>
    %27 = arith.mulf %21, %25 : vector<8x32xf32>
    %28 = arith.addf %26, %27 : vector<8x32xf32>
    %29 = math.tanh %28 : vector<8x32xf32>
    %30 = arith.mulf %23, %29 : vector<8x32xf32>
    %c4_i32_11 = arith.constant 4 : i32
    %31 = arith.muli %c0_i32_6, %c4_i32_11 : i32
    %c1_i32 = arith.constant 1 : i32
    %32 = arith.addi %31, %c1_i32 : i32
    %33 = arith.index_cast %32 : i32 to index
    %c0_12 = arith.constant 0 : index
    %c0_13 = arith.constant 0 : index
    %34 = vector.load %arg2[%33, %c0_12, %c0_13] : memref<8x8x128xbf16, #tpu.memory_space<vmem>>, vector<1x8x128xbf16>
    %35 = vector.shape_cast %34 : vector<1x8x128xbf16> to vector<8x128xbf16>
    %36 = arith.extf %35 : vector<8x128xbf16> to vector<8x128xf32>
    %37 = arith.truncf %30 : vector<8x32xf32> to vector<8x32xbf16>
    %cst_14 = arith.constant dense<0.000000e+00> : vector<8x128xf32>
    %38 = tpu.matmul %37, %3, %cst_14 {dimension_numbers = #tpu.dot_dimension_numbers<[1], [0], [0], [1], [0, 0, 1, 1], [], []>} : vector<8x32xbf16>, vector<32x128xbf16>, vector<8x128xf32> -> vector<8x128xf32>
    %39 = arith.addf %36, %38 : vector<8x128xf32>
    %40 = vector.extract_strided_slice %39 {offsets = [0, 0], sizes = [8, 96], strides = [1, 1]} : vector<8x128xf32> to vector<8x96xf32>
    %41 = arith.negf %40 : vector<8x96xf32>
    %42 = math.exp %41 : vector<8x96xf32>
    %cst_15 = arith.constant 1.000000e+00 : f32
    %43 = vector.broadcast %cst_15 : f32 to vector<8x96xf32>
    %44 = arith.addf %43, %42 : vector<8x96xf32>
    %45 = arith.divf %43, %44 : vector<8x96xf32>
    %46 = vector.extract_strided_slice %45 {offsets = [0, 0], sizes = [8, 32], strides = [1, 1]} : vector<8x96xf32> to vector<8x32xf32>
    %47 = vector.extract_strided_slice %45 {offsets = [0, 32], sizes = [8, 32], strides = [1, 1]} : vector<8x96xf32> to vector<8x32xf32>
    %48 = vector.extract_strided_slice %45 {offsets = [0, 64], sizes = [8, 32], strides = [1, 1]} : vector<8x96xf32> to vector<8x32xf32>
    %49 = vector.extract_strided_slice %39 {offsets = [0, 96], sizes = [8, 32], strides = [1, 1]} : vector<8x128xf32> to vector<8x32xf32>
    %50 = math.tanh %49 : vector<8x32xf32>
    %51 = arith.mulf %47, %28 : vector<8x32xf32>
    %52 = arith.mulf %46, %50 : vector<8x32xf32>
    %53 = arith.addf %51, %52 : vector<8x32xf32>
    %54 = math.tanh %53 : vector<8x32xf32>
    %55 = arith.mulf %48, %54 : vector<8x32xf32>
    %c4_i32_16 = arith.constant 4 : i32
    %56 = arith.muli %c0_i32_6, %c4_i32_16 : i32
    %c2_i32 = arith.constant 2 : i32
    %57 = arith.addi %56, %c2_i32 : i32
    %58 = arith.index_cast %57 : i32 to index
    %c0_17 = arith.constant 0 : index
    %c0_18 = arith.constant 0 : index
    %59 = vector.load %arg2[%58, %c0_17, %c0_18] : memref<8x8x128xbf16, #tpu.memory_space<vmem>>, vector<1x8x128xbf16>
    %60 = vector.shape_cast %59 : vector<1x8x128xbf16> to vector<8x128xbf16>
    %61 = arith.extf %60 : vector<8x128xbf16> to vector<8x128xf32>
    %62 = arith.truncf %55 : vector<8x32xf32> to vector<8x32xbf16>
    %cst_19 = arith.constant dense<0.000000e+00> : vector<8x128xf32>
    %63 = tpu.matmul %62, %3, %cst_19 {dimension_numbers = #tpu.dot_dimension_numbers<[1], [0], [0], [1], [0, 0, 1, 1], [], []>} : vector<8x32xbf16>, vector<32x128xbf16>, vector<8x128xf32> -> vector<8x128xf32>
    %64 = arith.addf %61, %63 : vector<8x128xf32>
    %65 = vector.extract_strided_slice %64 {offsets = [0, 0], sizes = [8, 96], strides = [1, 1]} : vector<8x128xf32> to vector<8x96xf32>
    %66 = arith.negf %65 : vector<8x96xf32>
    %67 = math.exp %66 : vector<8x96xf32>
    %cst_20 = arith.constant 1.000000e+00 : f32
    %68 = vector.broadcast %cst_20 : f32 to vector<8x96xf32>
    %69 = arith.addf %68, %67 : vector<8x96xf32>
    %70 = arith.divf %68, %69 : vector<8x96xf32>
    %71 = vector.extract_strided_slice %70 {offsets = [0, 0], sizes = [8, 32], strides = [1, 1]} : vector<8x96xf32> to vector<8x32xf32>
    %72 = vector.extract_strided_slice %70 {offsets = [0, 32], sizes = [8, 32], strides = [1, 1]} : vector<8x96xf32> to vector<8x32xf32>
    %73 = vector.extract_strided_slice %70 {offsets = [0, 64], sizes = [8, 32], strides = [1, 1]} : vector<8x96xf32> to vector<8x32xf32>
    %74 = vector.extract_strided_slice %64 {offsets = [0, 96], sizes = [8, 32], strides = [1, 1]} : vector<8x128xf32> to vector<8x32xf32>
    %75 = math.tanh %74 : vector<8x32xf32>
    %76 = arith.mulf %72, %53 : vector<8x32xf32>
    %77 = arith.mulf %71, %75 : vector<8x32xf32>
    %78 = arith.addf %76, %77 : vector<8x32xf32>
    %79 = math.tanh %78 : vector<8x32xf32>
    %80 = arith.mulf %73, %79 : vector<8x32xf32>
    %c4_i32_21 = arith.constant 4 : i32
    %81 = arith.muli %c0_i32_6, %c4_i32_21 : i32
    %c3_i32 = arith.constant 3 : i32
    %82 = arith.addi %81, %c3_i32 : i32
    %83 = arith.index_cast %82 : i32 to index
    %c0_22 = arith.constant 0 : index
    %c0_23 = arith.constant 0 : index
    %84 = vector.load %arg2[%83, %c0_22, %c0_23] : memref<8x8x128xbf16, #tpu.memory_space<vmem>>, vector<1x8x128xbf16>
    %85 = vector.shape_cast %84 : vector<1x8x128xbf16> to vector<8x128xbf16>
    %86 = arith.extf %85 : vector<8x128xbf16> to vector<8x128xf32>
    %87 = arith.truncf %80 : vector<8x32xf32> to vector<8x32xbf16>
    %cst_24 = arith.constant dense<0.000000e+00> : vector<8x128xf32>
    %88 = tpu.matmul %87, %3, %cst_24 {dimension_numbers = #tpu.dot_dimension_numbers<[1], [0], [0], [1], [0, 0, 1, 1], [], []>} : vector<8x32xbf16>, vector<32x128xbf16>, vector<8x128xf32> -> vector<8x128xf32>
    %89 = arith.addf %86, %88 : vector<8x128xf32>
    %90 = vector.extract_strided_slice %89 {offsets = [0, 0], sizes = [8, 96], strides = [1, 1]} : vector<8x128xf32> to vector<8x96xf32>
    %91 = arith.negf %90 : vector<8x96xf32>
    %92 = math.exp %91 : vector<8x96xf32>
    %cst_25 = arith.constant 1.000000e+00 : f32
    %93 = vector.broadcast %cst_25 : f32 to vector<8x96xf32>
    %94 = arith.addf %93, %92 : vector<8x96xf32>
    %95 = arith.divf %93, %94 : vector<8x96xf32>
    %96 = vector.extract_strided_slice %95 {offsets = [0, 0], sizes = [8, 32], strides = [1, 1]} : vector<8x96xf32> to vector<8x32xf32>
    %97 = vector.extract_strided_slice %95 {offsets = [0, 32], sizes = [8, 32], strides = [1, 1]} : vector<8x96xf32> to vector<8x32xf32>
    %98 = vector.extract_strided_slice %95 {offsets = [0, 64], sizes = [8, 32], strides = [1, 1]} : vector<8x96xf32> to vector<8x32xf32>
    %99 = vector.extract_strided_slice %89 {offsets = [0, 96], sizes = [8, 32], strides = [1, 1]} : vector<8x128xf32> to vector<8x32xf32>
    %100 = math.tanh %99 : vector<8x32xf32>
    %101 = arith.mulf %97, %78 : vector<8x32xf32>
    %102 = arith.mulf %96, %100 : vector<8x32xf32>
    %103 = arith.addf %101, %102 : vector<8x32xf32>
    %104 = math.tanh %103 : vector<8x32xf32>
    %105 = arith.mulf %98, %104 : vector<8x32xf32>
    %106 = tpu.concatenate %30, %55, %80, %105 in 1 : vector<8x32xf32>, vector<8x32xf32>, vector<8x32xf32>, vector<8x32xf32> -> vector<8x128xf32>
    %107 = arith.index_cast %c0_i32_6 : i32 to index
    %c0_26 = arith.constant 0 : index
    %c0_27 = arith.constant 0 : index
    %108 = vector.load %arg4[%107, %c0_26, %c0_27] : memref<2x8x128xf32, #tpu.memory_space<vmem>>, vector<1x8x128xf32>
    %109 = vector.shape_cast %108 : vector<1x8x128xf32> to vector<8x128xf32>
    %110 = vector.shape_cast %106 : vector<8x128xf32> to vector<1x8x128xf32>
    tpu.vector_store %arg4[%107, %c0_26, %c0_27], %110 {strides = array<i32>} : memref<2x8x128xf32, #tpu.memory_space<vmem>>, vector<1x8x128xf32>,
    %c1_i32_28 = arith.constant 1 : i32
    %c4_i32_29 = arith.constant 4 : i32
    %111 = arith.muli %c1_i32_28, %c4_i32_29 : i32
    %c0_i32_30 = arith.constant 0 : i32
    %112 = arith.addi %111, %c0_i32_30 : i32
    %113 = arith.index_cast %112 : i32 to index
    %c0_31 = arith.constant 0 : index
    %c0_32 = arith.constant 0 : index
    %114 = vector.load %arg2[%113, %c0_31, %c0_32] : memref<8x8x128xbf16, #tpu.memory_space<vmem>>, vector<1x8x128xbf16>
    %115 = vector.shape_cast %114 : vector<1x8x128xbf16> to vector<8x128xbf16>
    %116 = arith.extf %115 : vector<8x128xbf16> to vector<8x128xf32>
    %117 = arith.truncf %105 : vector<8x32xf32> to vector<8x32xbf16>
    %cst_33 = arith.constant dense<0.000000e+00> : vector<8x128xf32>
    %118 = tpu.matmul %117, %3, %cst_33 {dimension_numbers = #tpu.dot_dimension_numbers<[1], [0], [0], [1], [0, 0, 1, 1], [], []>} : vector<8x32xbf16>, vector<32x128xbf16>, vector<8x128xf32> -> vector<8x128xf32>
    %119 = arith.addf %116, %118 : vector<8x128xf32>
    %120 = vector.extract_strided_slice %119 {offsets = [0, 0], sizes = [8, 96], strides = [1, 1]} : vector<8x128xf32> to vector<8x96xf32>
    %121 = arith.negf %120 : vector<8x96xf32>
    %122 = math.exp %121 : vector<8x96xf32>
    %cst_34 = arith.constant 1.000000e+00 : f32
    %123 = vector.broadcast %cst_34 : f32 to vector<8x96xf32>
    %124 = arith.addf %123, %122 : vector<8x96xf32>
    %125 = arith.divf %123, %124 : vector<8x96xf32>
    %126 = vector.extract_strided_slice %125 {offsets = [0, 0], sizes = [8, 32], strides = [1, 1]} : vector<8x96xf32> to vector<8x32xf32>
    %127 = vector.extract_strided_slice %125 {offsets = [0, 32], sizes = [8, 32], strides = [1, 1]} : vector<8x96xf32> to vector<8x32xf32>
    %128 = vector.extract_strided_slice %125 {offsets = [0, 64], sizes = [8, 32], strides = [1, 1]} : vector<8x96xf32> to vector<8x32xf32>
    %129 = vector.extract_strided_slice %119 {offsets = [0, 96], sizes = [8, 32], strides = [1, 1]} : vector<8x128xf32> to vector<8x32xf32>
    %130 = math.tanh %129 : vector<8x32xf32>
    %131 = arith.mulf %127, %103 : vector<8x32xf32>
    %132 = arith.mulf %126, %130 : vector<8x32xf32>
    %133 = arith.addf %131, %132 : vector<8x32xf32>
    %134 = math.tanh %133 : vector<8x32xf32>
    %135 = arith.mulf %128, %134 : vector<8x32xf32>
    %c4_i32_35 = arith.constant 4 : i32
    %136 = arith.muli %c1_i32_28, %c4_i32_35 : i32
    %c1_i32_36 = arith.constant 1 : i32
    %137 = arith.addi %136, %c1_i32_36 : i32
    %138 = arith.index_cast %137 : i32 to index
    %c0_37 = arith.constant 0 : index
    %c0_38 = arith.constant 0 : index
    %139 = vector.load %arg2[%138, %c0_37, %c0_38] : memref<8x8x128xbf16, #tpu.memory_space<vmem>>, vector<1x8x128xbf16>
    %140 = vector.shape_cast %139 : vector<1x8x128xbf16> to vector<8x128xbf16>
    %141 = arith.extf %140 : vector<8x128xbf16> to vector<8x128xf32>
    %142 = arith.truncf %135 : vector<8x32xf32> to vector<8x32xbf16>
    %cst_39 = arith.constant dense<0.000000e+00> : vector<8x128xf32>
    %143 = tpu.matmul %142, %3, %cst_39 {dimension_numbers = #tpu.dot_dimension_numbers<[1], [0], [0], [1], [0, 0, 1, 1], [], []>} : vector<8x32xbf16>, vector<32x128xbf16>, vector<8x128xf32> -> vector<8x128xf32>
    %144 = arith.addf %141, %143 : vector<8x128xf32>
    %145 = vector.extract_strided_slice %144 {offsets = [0, 0], sizes = [8, 96], strides = [1, 1]} : vector<8x128xf32> to vector<8x96xf32>
    %146 = arith.negf %145 : vector<8x96xf32>
    %147 = math.exp %146 : vector<8x96xf32>
    %cst_40 = arith.constant 1.000000e+00 : f32
    %148 = vector.broadcast %cst_40 : f32 to vector<8x96xf32>
    %149 = arith.addf %148, %147 : vector<8x96xf32>
    %150 = arith.divf %148, %149 : vector<8x96xf32>
    %151 = vector.extract_strided_slice %150 {offsets = [0, 0], sizes = [8, 32], strides = [1, 1]} : vector<8x96xf32> to vector<8x32xf32>
    %152 = vector.extract_strided_slice %150 {offsets = [0, 32], sizes = [8, 32], strides = [1, 1]} : vector<8x96xf32> to vector<8x32xf32>
    %153 = vector.extract_strided_slice %150 {offsets = [0, 64], sizes = [8, 32], strides = [1, 1]} : vector<8x96xf32> to vector<8x32xf32>
    %154 = vector.extract_strided_slice %144 {offsets = [0, 96], sizes = [8, 32], strides = [1, 1]} : vector<8x128xf32> to vector<8x32xf32>
    %155 = math.tanh %154 : vector<8x32xf32>
    %156 = arith.mulf %152, %133 : vector<8x32xf32>
    %157 = arith.mulf %151, %155 : vector<8x32xf32>
    %158 = arith.addf %156, %157 : vector<8x32xf32>
    %159 = math.tanh %158 : vector<8x32xf32>
    %160 = arith.mulf %153, %159 : vector<8x32xf32>
    %c4_i32_41 = arith.constant 4 : i32
    %161 = arith.muli %c1_i32_28, %c4_i32_41 : i32
    %c2_i32_42 = arith.constant 2 : i32
    %162 = arith.addi %161, %c2_i32_42 : i32
    %163 = arith.index_cast %162 : i32 to index
    %c0_43 = arith.constant 0 : index
    %c0_44 = arith.constant 0 : index
    %164 = vector.load %arg2[%163, %c0_43, %c0_44] : memref<8x8x128xbf16, #tpu.memory_space<vmem>>, vector<1x8x128xbf16>
    %165 = vector.shape_cast %164 : vector<1x8x128xbf16> to vector<8x128xbf16>
    %166 = arith.extf %165 : vector<8x128xbf16> to vector<8x128xf32>
    %167 = arith.truncf %160 : vector<8x32xf32> to vector<8x32xbf16>
    %cst_45 = arith.constant dense<0.000000e+00> : vector<8x128xf32>
    %168 = tpu.matmul %167, %3, %cst_45 {dimension_numbers = #tpu.dot_dimension_numbers<[1], [0], [0], [1], [0, 0, 1, 1], [], []>} : vector<8x32xbf16>, vector<32x128xbf16>, vector<8x128xf32> -> vector<8x128xf32>
    %169 = arith.addf %166, %168 : vector<8x128xf32>
    %170 = vector.extract_strided_slice %169 {offsets = [0, 0], sizes = [8, 96], strides = [1, 1]} : vector<8x128xf32> to vector<8x96xf32>
    %171 = arith.negf %170 : vector<8x96xf32>
    %172 = math.exp %171 : vector<8x96xf32>
    %cst_46 = arith.constant 1.000000e+00 : f32
    %173 = vector.broadcast %cst_46 : f32 to vector<8x96xf32>
    %174 = arith.addf %173, %172 : vector<8x96xf32>
    %175 = arith.divf %173, %174 : vector<8x96xf32>
    %176 = vector.extract_strided_slice %175 {offsets = [0, 0], sizes = [8, 32], strides = [1, 1]} : vector<8x96xf32> to vector<8x32xf32>
    %177 = vector.extract_strided_slice %175 {offsets = [0, 32], sizes = [8, 32], strides = [1, 1]} : vector<8x96xf32> to vector<8x32xf32>
    %178 = vector.extract_strided_slice %175 {offsets = [0, 64], sizes = [8, 32], strides = [1, 1]} : vector<8x96xf32> to vector<8x32xf32>
    %179 = vector.extract_strided_slice %169 {offsets = [0, 96], sizes = [8, 32], strides = [1, 1]} : vector<8x128xf32> to vector<8x32xf32>
    %180 = math.tanh %179 : vector<8x32xf32>
    %181 = arith.mulf %177, %158 : vector<8x32xf32>
    %182 = arith.mulf %176, %180 : vector<8x32xf32>
    %183 = arith.addf %181, %182 : vector<8x32xf32>
    %184 = math.tanh %183 : vector<8x32xf32>
    %185 = arith.mulf %178, %184 : vector<8x32xf32>
    %c4_i32_47 = arith.constant 4 : i32
    %186 = arith.muli %c1_i32_28, %c4_i32_47 : i32
    %c3_i32_48 = arith.constant 3 : i32
    %187 = arith.addi %186, %c3_i32_48 : i32
    %188 = arith.index_cast %187 : i32 to index
    %c0_49 = arith.constant 0 : index
    %c0_50 = arith.constant 0 : index
    %189 = vector.load %arg2[%188, %c0_49, %c0_50] : memref<8x8x128xbf16, #tpu.memory_space<vmem>>, vector<1x8x128xbf16>
    %190 = vector.shape_cast %189 : vector<1x8x128xbf16> to vector<8x128xbf16>
    %191 = arith.extf %190 : vector<8x128xbf16> to vector<8x128xf32>
    %192 = arith.truncf %185 : vector<8x32xf32> to vector<8x32xbf16>
    %cst_51 = arith.constant dense<0.000000e+00> : vector<8x128xf32>
    %193 = tpu.matmul %192, %3, %cst_51 {dimension_numbers = #tpu.dot_dimension_numbers<[1], [0], [0], [1], [0, 0, 1, 1], [], []>} : vector<8x32xbf16>, vector<32x128xbf16>, vector<8x128xf32> -> vector<8x128xf32>
    %194 = arith.addf %191, %193 : vector<8x128xf32>
    %195 = vector.extract_strided_slice %194 {offsets = [0, 0], sizes = [8, 96], strides = [1, 1]} : vector<8x128xf32> to vector<8x96xf32>
    %196 = arith.negf %195 : vector<8x96xf32>
    %197 = math.exp %196 : vector<8x96xf32>
    %cst_52 = arith.constant 1.000000e+00 : f32
    %198 = vector.broadcast %cst_52 : f32 to vector<8x96xf32>
    %199 = arith.addf %198, %197 : vector<8x96xf32>
    %200 = arith.divf %198, %199 : vector<8x96xf32>
    %201 = vector.extract_strided_slice %200 {offsets = [0, 0], sizes = [8, 32], strides = [1, 1]} : vector<8x96xf32> to vector<8x32xf32>
    %202 = vector.extract_strided_slice %200 {offsets = [0, 32], sizes = [8, 32], strides = [1, 1]} : vector<8x96xf32> to vector<8x32xf32>
    %203 = vector.extract_strided_slice %200 {offsets = [0, 64], sizes = [8, 32], strides = [1, 1]} : vector<8x96xf32> to vector<8x32xf32>
    %204 = vector.extract_strided_slice %194 {offsets = [0, 96], sizes = [8, 32], strides = [1, 1]} : vector<8x128xf32> to vector<8x32xf32>
    %205 = math.tanh %204 : vector<8x32xf32>
    %206 = arith.mulf %202, %183 : vector<8x32xf32>
    %207 = arith.mulf %201, %205 : vector<8x32xf32>
    %208 = arith.addf %206, %207 : vector<8x32xf32>
    %209 = math.tanh %208 : vector<8x32xf32>
    %210 = arith.mulf %203, %209 : vector<8x32xf32>
    %211 = tpu.concatenate %135, %160, %185, %210 in 1 : vector<8x32xf32>, vector<8x32xf32>, vector<8x32xf32>, vector<8x32xf32> -> vector<8x128xf32>
    %212 = arith.index_cast %c1_i32_28 : i32 to index
    %c0_53 = arith.constant 0 : index
    %c0_54 = arith.constant 0 : index
    %213 = vector.load %arg4[%212, %c0_53, %c0_54] : memref<2x8x128xf32, #tpu.memory_space<vmem>>, vector<1x8x128xf32>
    %214 = vector.shape_cast %213 : vector<1x8x128xf32> to vector<8x128xf32>
    %215 = vector.shape_cast %211 : vector<8x128xf32> to vector<1x8x128xf32>
    tpu.vector_store %arg4[%212, %c0_53, %c0_54], %215 {strides = array<i32>} : memref<2x8x128xf32, #tpu.memory_space<vmem>>, vector<1x8x128xf32>,
    %c2_i32_55 = arith.constant 2 : i32
    %c0_56 = arith.constant 0 : index
    %c0_57 = arith.constant 0 : index
    %216 = vector.load %arg5[%c0_56, %c0_57] : memref<8x32xf32, #tpu.memory_space<vmem>>, vector<8x32xf32>
    tpu.vector_store %arg5[%c0_56, %c0_57], %210 {strides = array<i32>} : memref<8x32xf32, #tpu.memory_space<vmem>>, vector<8x32xf32>,
    %c0_58 = arith.constant 0 : index
    %c0_59 = arith.constant 0 : index
    %217 = vector.load %arg6[%c0_58, %c0_59] : memref<8x32xf32, #tpu.memory_space<vmem>>, vector<8x32xf32>
    tpu.vector_store %arg6[%c0_58, %c0_59], %208 {strides = array<i32>} : memref<8x32xf32, #tpu.memory_space<vmem>>, vector<8x32xf32>,
    return
  }
  func.func @transform_0(%arg0: i32, %arg1: i32) -> (i32, i32, i32) {
    %c0_i32 = arith.constant 0 : i32
    %c0_i32_0 = arith.constant 0 : i32
    return %arg1, %arg0, %c0_i32 : i32, i32, i32
  }
  func.func @transform_1(%arg0: i32, %arg1: i32) -> (i32, i32) {
    %c0_i32 = arith.constant 0 : i32
    %c0_i32_0 = arith.constant 0 : i32
    %c0_i32_1 = arith.constant 0 : i32
    return %c0_i32, %c0_i32_0 : i32, i32
  }
  func.func @transform_2(%arg0: i32, %arg1: i32) -> (i32, i32, i32) {
    %c0_i32 = arith.constant 0 : i32
    %c0_i32_0 = arith.constant 0 : i32
    return %arg1, %arg0, %c0_i32 : i32, i32, i32
  }
}

</mosaic_0001>

<bundles_post_ra>
// kernel: bidirectional_lstm_forward.1
= control target key start
LH: loop header
LB: loop body
LE: loop exit
PB: predicated region body
PF: predicated region fallthrough
CT: control target
= control target key end

     0   :  { %vm16_vm0 = vcmask 261120   ;;  %v871_v0 = vmov 0.0   ;;  %vm872_vm1 = vmmov 0   ;;  %s873_s14 = smov 32   ;;  %s874_s15 = smov 64   ;;  %vm351_vm2 = vcmask 523264   ;;  %s1050_s1 = inlined_call_operand.vmem [shape: bf16[32,128], index: 1, kind: input, shape index: {}]   ;;  %s1051_s0 = inlined_call_operand.vmem [shape: bf16[8,8,128], index: 0, kind: input, shape index: {}]   ;;  %s1052_s2 = inlined_call_operand.vmem [shape: f32[2,8,128], index: 2, kind: output, shape index: {}]  }
   0x1   :  { %736 = vmatprep.subr.bf16.mxu0 %v871_v0  ;;  %v895_v1 = vld [vmem:[%s1050_s1] sm:$0xff]   ;;  %740 = vmatprep.mubr.msk.bf16.mxu0 %vm872_vm1, %v871_v0  ;;  %17 = vst.msk [vmem:[#allocation2] sm:$0xff] %vm16_vm0, %v871_v0  ;;  %18 = vst.msk [vmem:[#allocation3] sm:$0xff] %vm16_vm0, %v871_v0  ;;  %v910_v2 = vld [vmem:[%s1050_s1 + $0x8] sm:$0xff]   ;;  %vm353_vm3 = vcmask 785408  }
   0x2   :  { %744 = vmatprep.subr.bf16.mxu1 %v871_v0  ;;  %748 = vmatprep.mubr.msk.bf16.mxu1 %vm872_vm1, %v871_v0  ;;  %v25_v5 = vld [vmem:[%s1051_s0] sm:$0xff]   ;;  %v693_v50 = vld [vmem:[%s1051_s0 + $0x8] sm:$0xff]  }
   0x3   :  { %737 = vmatpush3.bf16.msra.mxu0 %v895_v1  ;;  %745 = vmatpush3.bf16.msra.mxu1 %v895_v1  ;;  %v26_v6 = vunpack.c.l.bf16 %v25_v5  ;;  %v115_v29 = vunpack.c.h.bf16 %v25_v5  ;;  %v190_v51 = vunpack.c.l.bf16 %v693_v50 }
   0x4   :  { %738 = vmatprep.subr.bf16.mxu0 %v871_v0  ;;  %746 = vmatprep.subr.bf16.mxu1 %v871_v0 }
   0x7   :  { %739 = vmatpush3.bf16.msra.mxu0 %v910_v2  ;;  %747 = vmatpush3.bf16.msra.mxu1 %v910_v2 }
   0x8   :  { %v23_v3 = vld [vmem:[#allocation2] sm:$0xff]  ;;  %752 = vmatprep.subr.bf16.mxu0 %v871_v0  ;;  %760 = vmatprep.subr.bf16.mxu1 %v871_v0  ;;  %v24_v13 = vld [vmem:[#allocation3] sm:$0xff] }
   0x9   :  { %v27_v4 = vpack.c.bf16 %v23_v3, %v23_v3 }
   0xb   :  { %741 = vmatmul.mubr.msk.bf16.vlgmr.msra.gmra.mrb[0].mxu0 %vm16_vm0, %v27_v4 }
   0xc   :  { %753 = vmatpush3.bf16.msra.mxu0 %v895_v1  ;;  %756 = vmatprep.mubr.msk.bf16.mxu0 %vm872_vm1, %v871_v0 }
   0xd   :  { %754 = vmatprep.subr.bf16.mxu0 %v871_v0 }
  0x10   :  { %755 = vmatpush3.bf16.msra.mxu0 %v910_v2 }
  0x11   :  { %768 = vmatprep.subr.bf16.mxu0 %v871_v0 }
  0xde   :  { %v78_v7 = vpop.f32.mrb[0].mxu0 }
  0xdf   :  { %v84_v8 = vadd.f32 %v78_v7, %v26_v6  ;;  %v742_v9 = vpop.f32.mrb[1].mxu0 }
  0xe0   :  { %v81_v10 = vpop.f32.mrb[2].mxu0 }
  0xe1   :  { %807 = vtanh.f32 %v84_v8  ;;  %v743_v11 = vpop.f32.mrb[3].mxu0  ;;  %v689_v14 = vmul.f32 -1.442695, %v84_v8 }
  0xe2   :  { %v265_v11 = vunpack.c.h.bf16 %v693_v50 }
  0xe3   :  { %809 = vpow2.f32 %v689_v14 }
  0xeb   :  { %v808_v12 = vpop.eup %807 }
  0xec   :  { %98 = vrot.lane.b32.xlu0 %v808_v12, %s873_s14 }
  0xed   :  { %v810_v15 = vpop.eup %809 }
  0xee   :  { %v88_v16 = vadd.f32 1.0, %v810_v15 }
  0xf0   :  { %93 = vrot.lane.b32.xlu0 %v24_v13, %s873_s14  ;;  %811 = vrcp.f32 %v88_v16 }
  0xfa   :  { %v812_v17 = vpop.eup %811 }
 0x15e   :  { %v99_v18 = vpop.permute.xlu0 %98 }
 0x15f   :  { %v101_v19 = vmul.f32 %v812_v17, %v99_v18 }
 0x161   :  { %103 = vrot.lane.b32.xlu1 %v101_v19, %s873_s14 }
 0x162   :  { %v94_v20 = vpop.permute.xlu0 %93 }
 0x163   :  { %v96_v21 = vmul.f32 %v812_v17, %v94_v20 }
 0x1d3   :  { %v104_v22 = vpop.permute.xlu1 %103 }
 0x1d4   :  { %v106_v23 = vadd.f32 %v104_v22, %v96_v21 }
 0x1d6   :  { %813 = vtanh.f32 %v106_v23 }
 0x1e0   :  { %v814_v24 = vpop.eup %813 }
 0x1e1   :  { %109 = vrot.lane.b32.xlu1 %v814_v24, %s873_s14 }
 0x253   :  { %v110_v25 = vpop.permute.xlu1 %109 }
 0x254   :  { %v933_v26 = vmul.f32 %v812_v17, %v110_v25 }
 0x256   :  { %v116_v27 = vpack.c.bf16 %v933_v26, %v933_v26 }
 0x258   :  { %118 = vrot.lane.b32.xlu0 %v116_v27, %s874_s15 }
 0x2ca   :  { %v119_v28 = vpop.permute.xlu0 %118 }
 0x2cb   :  { %749 = vmatmul.mubr.msk.bf16.vlgmr.msra.gmra.mrb[0].mxu1 %vm16_vm0, %v119_v28 }
 0x2cc   :  { %761 = vmatpush3.bf16.msra.mxu1 %v895_v1  ;;  %764 = vmatprep.mubr.msk.bf16.mxu1 %vm872_vm1, %v871_v0 }
 0x2cd   :  { %762 = vmatprep.subr.bf16.mxu1 %v871_v0 }
 0x2d0   :  { %763 = vmatpush3.bf16.msra.mxu1 %v910_v2 }
 0x2d1   :  { %776 = vmatprep.subr.bf16.mxu1 %v871_v0 }
 0x39e   :  { %v157_v30 = vpop.f32.mrb[0].mxu1 }
 0x39f   :  { %v163_v31 = vadd.f32 %v157_v30, %v115_v29  ;;  %v750_v32 = vpop.f32.mrb[1].mxu1 }
 0x3a0   :  { %v160_v33 = vpop.f32.mrb[2].mxu1 }
 0x3a1   :  { %815 = vtanh.f32 %v163_v31  ;;  %v751_v34 = vpop.f32.mrb[3].mxu1  ;;  %v692_v36 = vmul.f32 -1.442695, %v163_v31  ;;  %v699_v33 = vld [vmem:[%s1051_s0 + $0x10] sm:$0xff]  }
 0x3a2   :  { %v358_v34 = vunpack.c.l.bf16 %v699_v33 }
 0x3a3   :  { %817 = vpow2.f32 %v692_v36 }
 0x3ab   :  { %v816_v35 = vpop.eup %815 }
 0x3ac   :  { %173 = vrot.lane.b32.xlu1 %v816_v35, %s873_s14 }
 0x3ad   :  { %v818_v37 = vpop.eup %817 }
 0x3ae   :  { %v167_v38 = vadd.f32 1.0, %v818_v37 }
 0x3b0   :  { %819 = vrcp.f32 %v167_v38 }
 0x3ba   :  { %v820_v39 = vpop.eup %819 }
 0x3bb   :  { %v171_v42 = vmul.f32 %v820_v39, %v106_v23 }
 0x41e   :  { %v174_v40 = vpop.permute.xlu1 %173 }
 0x41f   :  { %v176_v41 = vmul.f32 %v820_v39, %v174_v40 }
 0x421   :  { %178 = vrot.lane.b32.xlu0 %v176_v41, %s873_s14 }
 0x493   :  { %v179_v43 = vpop.permute.xlu0 %178 }
 0x494   :  { %v181_v44 = vadd.f32 %v179_v43, %v171_v42 }
 0x496   :  { %821 = vtanh.f32 %v181_v44 }
 0x4a0   :  { %v822_v45 = vpop.eup %821 }
 0x4a1   :  { %184 = vrot.lane.b32.xlu1 %v822_v45, %s873_s14 }
 0x513   :  { %v185_v46 = vpop.permute.xlu1 %184 }
 0x514   :  { %v948_v47 = vmul.f32 %v820_v39, %v185_v46 }
 0x516   :  { %v191_v48 = vpack.c.bf16 %v948_v47, %v948_v47 }
 0x518   :  { %193 = vrot.lane.b32.xlu0 %v191_v48, %s874_s15 }
 0x58a   :  { %v194_v49 = vpop.permute.xlu0 %193 }
 0x58b   :  { %757 = vmatmul.mubr.msk.bf16.vlgmr.msra.gmra.mrb[4].mxu0 %vm16_vm0, %v194_v49 }
 0x58c   :  { %769 = vmatpush3.bf16.msra.mxu0 %v895_v1  ;;  %772 = vmatprep.mubr.msk.bf16.mxu0 %vm872_vm1, %v871_v0 }
 0x58d   :  { %770 = vmatprep.subr.bf16.mxu0 %v871_v0 }
 0x590   :  { %771 = vmatpush3.bf16.msra.mxu0 %v910_v2 }
 0x591   :  { %784 = vmatprep.subr.bf16.mxu0 %v871_v0 }
 0x65e   :  { %v232_v52 = vpop.f32.mrb[4].mxu0 }
 0x65f   :  { %v238_v53 = vadd.f32 %v232_v52, %v190_v51  ;;  %v758_v54 = vpop.f32.mrb[5].mxu0 }
 0x660   :  { %v235_v55 = vpop.f32.mrb[6].mxu0 }
 0x661   :  { %823 = vtanh.f32 %v238_v53  ;;  %v759_v56 = vpop.f32.mrb[7].mxu0  ;;  %v695_v58 = vmul.f32 -1.442695, %v238_v53 }
 0x662   :  { %v433_v56 = vunpack.c.h.bf16 %v699_v33 }
 0x663   :  { %825 = vpow2.f32 %v695_v58 }
 0x66b   :  { %v824_v57 = vpop.eup %823 }
 0x66c   :  { %248 = vrot.lane.b32.xlu1 %v824_v57, %s873_s14 }
 0x66d   :  { %v826_v59 = vpop.eup %825 }
 0x66e   :  { %v242_v60 = vadd.f32 1.0, %v826_v59 }
 0x670   :  { %827 = vrcp.f32 %v242_v60 }
 0x67a   :  { %v828_v61 = vpop.eup %827 }
 0x67b   :  { %v246_v3 = vmul.f32 %v828_v61, %v181_v44 }
 0x6de   :  { %v249_v62 = vpop.permute.xlu1 %248 }
 0x6df   :  { %v251_v63 = vmul.f32 %v828_v61, %v249_v62 }
 0x6e1   :  { %253 = vrot.lane.b32.xlu0 %v251_v63, %s873_s14 }
 0x753   :  { %v254_v4 = vpop.permute.xlu0 %253 }
 0x754   :  { %v256_v5 = vadd.f32 %v254_v4, %v246_v3 }
 0x756   :  { %829 = vtanh.f32 %v256_v5 }
 0x760   :  { %v830_v6 = vpop.eup %829 }
 0x761   :  { %259 = vrot.lane.b32.xlu1 %v830_v6, %s873_s14 }
 0x7d3   :  { %v260_v7 = vpop.permute.xlu1 %259 }
 0x7d4   :  { %v966_v8 = vmul.f32 %v828_v61, %v260_v7 }
 0x7d6   :  { %v266_v9 = vpack.c.bf16 %v966_v8, %v966_v8 }
 0x7d8   :  { %268 = vrot.lane.b32.xlu0 %v266_v9, %s874_s15 }
 0x84a   :  { %v269_v10 = vpop.permute.xlu0 %268 }
 0x84b   :  { %765 = vmatmul.mubr.msk.bf16.vlgmr.msra.gmra.mrb[4].mxu1 %vm16_vm0, %v269_v10 }
 0x84c   :  { %777 = vmatpush3.bf16.msra.mxu1 %v895_v1  ;;  %780 = vmatprep.mubr.msk.bf16.mxu1 %vm872_vm1, %v871_v0 }
 0x84d   :  { %778 = vmatprep.subr.bf16.mxu1 %v871_v0 }
 0x850   :  { %779 = vmatpush3.bf16.msra.mxu1 %v910_v2 }
 0x851   :  { %792 = vmatprep.subr.bf16.mxu1 %v871_v0 }
 0x91e   :  { %v307_v12 = vpop.f32.mrb[4].mxu1 }
 0x91f   :  { %v313_v13 = vadd.f32 %v307_v12, %v265_v11  ;;  %v766_v14 = vpop.f32.mrb[5].mxu1 }
 0x920   :  { %v310_v15 = vpop.f32.mrb[6].mxu1  ;;  %v705_v14 = vld [vmem:[%s1051_s0 + $0x18] sm:$0xff]   ;;  %s875_s0 = smov 96  }
 0x921   :  { %831 = vtanh.f32 %v313_v13  ;;  %v767_v16 = vpop.f32.mrb[7].mxu1  ;;  %v698_v18 = vmul.f32 -1.442695, %v313_v13  ;;  %v508_v15 = vunpack.c.l.bf16 %v705_v14 }
 0x923   :  { %833 = vpow2.f32 %v698_v18 }
 0x92b   :  { %v832_v17 = vpop.eup %831 }
 0x92c   :  { %323 = vrot.lane.b32.xlu1 %v832_v17, %s873_s14 }
 0x92d   :  { %v834_v19 = vpop.eup %833 }
 0x92e   :  { %v317_v20 = vadd.f32 1.0, %v834_v19 }
 0x930   :  { %835 = vrcp.f32 %v317_v20 }
 0x93a   :  { %v836_v21 = vpop.eup %835 }
 0x93b   :  { %v321_v24 = vmul.f32 %v836_v21, %v256_v5 }
 0x99e   :  { %v324_v22 = vpop.permute.xlu1 %323 }
 0x99f   :  { %v326_v23 = vmul.f32 %v836_v21, %v324_v22 }
 0x9a1   :  { %328 = vrot.lane.b32.xlu0 %v326_v23, %s873_s14 }
 0xa13   :  { %v329_v25 = vpop.permute.xlu0 %328 }
 0xa14   :  { %v331_v27 = vadd.f32 %v329_v25, %v321_v24 }
 0xa16   :  { %837 = vtanh.f32 %v331_v27 }
 0xa20   :  { %v838_v28 = vpop.eup %837 }
 0xa21   :  { %334 = vrot.lane.b32.xlu1 %v838_v28, %s873_s14 }
 0xa93   :  { %v335_v29 = vpop.permute.xlu1 %334 }
 0xa94   :  { %v981_v30 = vmul.f32 %v836_v21, %v335_v29 }
 0xa96   :  { %v359_v31 = vpack.c.bf16 %v981_v30, %v981_v30 }
 0xa98   :  { %361 = vrot.lane.b32.xlu0 %v359_v31, %s874_s15 }
 0xb0a   :  { %v362_v32 = vpop.permute.xlu0 %361 }
 0xb0b   :  { %773 = vmatmul.mubr.msk.bf16.vlgmr.msra.gmra.mrb[8].mxu0 %vm16_vm0, %v362_v32 }
 0xb0c   :  { %785 = vmatpush3.bf16.msra.mxu0 %v895_v1  ;;  %788 = vmatprep.mubr.msk.bf16.mxu0 %vm872_vm1, %v871_v0 }
 0xb0d   :  { %786 = vmatprep.subr.bf16.mxu0 %v871_v0 }
 0xb10   :  { %787 = vmatpush3.bf16.msra.mxu0 %v910_v2 }
 0xbde   :  { %v400_v35 = vpop.f32.mrb[8].mxu0 }
 0xbdf   :  { %v406_v36 = vadd.f32 %v400_v35, %v358_v34  ;;  %v774_v37 = vpop.f32.mrb[9].mxu0 }
 0xbe0   :  { %v403_v38 = vpop.f32.mrb[10].mxu0 }
 0xbe1   :  { %839 = vtanh.f32 %v406_v36  ;;  %v775_v39 = vpop.f32.mrb[11].mxu0  ;;  %v701_v41 = vmul.f32 -1.442695, %v406_v36  ;;  %v583_v38 = vunpack.c.h.bf16 %v705_v14 }
 0xbe3   :  { %841 = vpow2.f32 %v701_v41 }
 0xbeb   :  { %v840_v40 = vpop.eup %839 }
 0xbec   :  { %416 = vrot.lane.b32.xlu1 %v840_v40, %s873_s14 }
 0xbed   :  { %v842_v42 = vpop.eup %841 }
 0xbee   :  { %v410_v43 = vadd.f32 1.0, %v842_v42 }
 0xbf0   :  { %843 = vrcp.f32 %v410_v43 }
 0xbfa   :  { %v844_v44 = vpop.eup %843 }
 0xbfb   :  { %v414_v48 = vmul.f32 %v844_v44, %v331_v27 }
 0xc5e   :  { %v417_v45 = vpop.permute.xlu1 %416 }
 0xc5f   :  { %v419_v46 = vmul.f32 %v844_v44, %v417_v45 }
 0xc61   :  { %421 = vrot.lane.b32.xlu0 %v419_v46, %s873_s14 }
 0xcd3   :  { %v422_v49 = vpop.permute.xlu0 %421 }
 0xcd4   :  { %v424_v50 = vadd.f32 %v422_v49, %v414_v48 }
 0xcd6   :  { %845 = vtanh.f32 %v424_v50 }
 0xce0   :  { %v846_v51 = vpop.eup %845 }
 0xce1   :  { %427 = vrot.lane.b32.xlu1 %v846_v51, %s873_s14 }
 0xd53   :  { %v428_v52 = vpop.permute.xlu1 %427 }
 0xd54   :  { %v998_v53 = vmul.f32 %v844_v44, %v428_v52 }
 0xd56   :  { %v434_v54 = vpack.c.bf16 %v998_v53, %v998_v53 }
 0xd58   :  { %436 = vrot.lane.b32.xlu0 %v434_v54, %s874_s15 }
 0xdca   :  { %v437_v55 = vpop.permute.xlu0 %436 }
 0xdcb   :  { %781 = vmatmul.mubr.msk.bf16.vlgmr.msra.gmra.mrb[8].mxu1 %vm16_vm0, %v437_v55 }
 0xdcc   :  { %793 = vmatpush3.bf16.msra.mxu1 %v895_v1  ;;  %796 = vmatprep.mubr.msk.bf16.mxu1 %vm872_vm1, %v871_v0 }
 0xdcd   :  { %794 = vmatprep.subr.bf16.mxu1 %v871_v0 }
 0xdd0   :  { %795 = vmatpush3.bf16.msra.mxu1 %v910_v2 }
 0xe9e   :  { %v475_v57 = vpop.f32.mrb[8].mxu1 }
 0xe9f   :  { %v481_v58 = vadd.f32 %v475_v57, %v433_v56  ;;  %v782_v59 = vpop.f32.mrb[9].mxu1 }
 0xea0   :  { %v478_v60 = vpop.f32.mrb[10].mxu1 }
 0xea1   :  { %847 = vtanh.f32 %v481_v58  ;;  %v783_v61 = vpop.f32.mrb[11].mxu1  ;;  %v704_v63 = vmul.f32 -1.442695, %v481_v58 }
 0xea3   :  { %849 = vpow2.f32 %v704_v63 }
 0xeab   :  { %v848_v62 = vpop.eup %847 }
 0xeac   :  { %491 = vrot.lane.b32.xlu1 %v848_v62, %s873_s14 }
 0xead   :  { %v850_v1 = vpop.eup %849 }
 0xeae   :  { %v485_v3 = vadd.f32 1.0, %v850_v1 }
 0xeb0   :  { %851 = vrcp.f32 %v485_v3 }
 0xeba   :  { %v852_v4 = vpop.eup %851 }
 0xebb   :  { %v489_v2 = vmul.f32 %v852_v4, %v424_v50 }
 0xf1e   :  { %v492_v5 = vpop.permute.xlu1 %491 }
 0xf1f   :  { %v494_v0 = vmul.f32 %v852_v4, %v492_v5 }
 0xf21   :  { %496 = vrot.lane.b32.xlu0 %v494_v0, %s873_s14 }
 0xf93   :  { %v497_v6 = vpop.permute.xlu0 %496 }
 0xf94   :  { %v499_v7 = vadd.f32 %v497_v6, %v489_v2 }
 0xf96   :  { %853 = vtanh.f32 %v499_v7 }
 0xfa0   :  { %v854_v9 = vpop.eup %853 }
 0xfa1   :  { %502 = vrot.lane.b32.xlu1 %v854_v9, %s873_s14 }
0x1013   :  { %v503_v10 = vpop.permute.xlu1 %502 }
0x1014   :  { %v1012_v11 = vmul.f32 %v852_v4, %v503_v10 }
0x1016   :  { %v509_v12 = vpack.c.bf16 %v1012_v11, %v1012_v11 }
0x1018   :  { %511 = vrot.lane.b32.xlu0 %v509_v12, %s874_s15 }
0x108a   :  { %v512_v13 = vpop.permute.xlu0 %511 }
0x108b   :  { %789 = vmatmul.mubr.msk.bf16.vlgmr.msra.gmra.mrb[12].mxu0 %vm16_vm0, %v512_v13 }
0x115e   :  { %v550_v16 = vpop.f32.mrb[12].mxu0 }
0x115f   :  { %v556_v17 = vadd.f32 %v550_v16, %v508_v15  ;;  %v790_v18 = vpop.f32.mrb[13].mxu0 }
0x1160   :  { %v553_v19 = vpop.f32.mrb[14].mxu0 }
0x1161   :  { %855 = vtanh.f32 %v556_v17  ;;  %v791_v20 = vpop.f32.mrb[15].mxu0  ;;  %v707_v22 = vmul.f32 -1.442695, %v556_v17 }
0x1163   :  { %857 = vpow2.f32 %v707_v22 }
0x116b   :  { %v856_v21 = vpop.eup %855 }
0x116c   :  { %566 = vrot.lane.b32.xlu1 %v856_v21, %s873_s14 }
0x116d   :  { %v858_v23 = vpop.eup %857 }
0x116e   :  { %v560_v24 = vadd.f32 1.0, %v858_v23 }
0x1170   :  { %859 = vrcp.f32 %v560_v24 }
0x117a   :  { %v860_v25 = vpop.eup %859 }
0x117b   :  { %v564_v29 = vmul.f32 %v860_v25, %v499_v7 }
0x11de   :  { %v567_v27 = vpop.permute.xlu1 %566 }
0x11df   :  { %v569_v28 = vmul.f32 %v860_v25, %v567_v27 }
0x11e1   :  { %571 = vrot.lane.b32.xlu0 %v569_v28, %s873_s14 }
0x1253   :  { %v572_v31 = vpop.permute.xlu0 %571 }
0x1254   :  { %v574_v32 = vadd.f32 %v572_v31, %v564_v29 }
0x1256   :  { %861 = vtanh.f32 %v574_v32 }
0x1260   :  { %v862_v33 = vpop.eup %861 }
0x1261   :  { %577 = vrot.lane.b32.xlu1 %v862_v33, %s873_s14 }
0x12d3   :  { %v578_v34 = vpop.permute.xlu1 %577 }
0x12d4   :  { %v580_v35 = vmul.f32 %v860_v25, %v578_v34 }
0x12d6   :  { %v584_v36 = vpack.c.bf16 %v580_v35, %v580_v35 }
0x12d8   :  { %586 = vrot.lane.b32.xlu0 %v584_v36, %s874_s15 }
0x134a   :  { %v587_v37 = vpop.permute.xlu0 %586 }
0x134b   :  { %797 = vmatmul.mubr.msk.bf16.vlgmr.msra.gmra.mrb[12].mxu1 %vm16_vm0, %v587_v37 }
0x141e   :  { %v625_v39 = vpop.f32.mrb[12].mxu1 }
0x141f   :  { %v631_v40 = vadd.f32 %v625_v39, %v583_v38  ;;  %v798_v41 = vpop.f32.mrb[13].mxu1 }
0x1420   :  { %v628_v42 = vpop.f32.mrb[14].mxu1 }
0x1421   :  { %863 = vtanh.f32 %v631_v40  ;;  %v799_v43 = vpop.f32.mrb[15].mxu1  ;;  %v710_v45 = vmul.f32 -1.442695, %v631_v40 }
0x1423   :  { %865 = vpow2.f32 %v710_v45 }
0x142b   :  { %v864_v44 = vpop.eup %863 }
0x142c   :  { %641 = vrot.lane.b32.xlu1 %v864_v44, %s873_s14 }
0x142d   :  { %v866_v46 = vpop.eup %865 }
0x142e   :  { %v635_v48 = vadd.f32 1.0, %v866_v46 }
0x1430   :  { %867 = vrcp.f32 %v635_v48 }
0x143a   :  { %v868_v49 = vpop.eup %867 }
0x143b   :  { %v639_v52 = vmul.f32 %v868_v49, %v574_v32 }
0x149e   :  { %v642_v50 = vpop.permute.xlu1 %641 }
0x149f   :  { %v644_v51 = vmul.f32 %v868_v49, %v642_v50 }
0x14a1   :  { %646 = vrot.lane.b32.xlu0 %v644_v51, %s873_s14 }
0x14a5   :  { %339 = vrot.lane.b32.xlu0 %v933_v26, %s874_s15 }
0x14a9   :  { %657 = vrot.lane.b32.xlu0 %v998_v53, %s874_s15 }
0x14ad   :  { %347 = vrot.lane.b32.xlu0 %v981_v30, %s873_s14 }
0x1513   :  { %v647_v54 = vpop.permute.xlu0 %646 }
0x1514   :  { %v649_v55 = vadd.f32 %v647_v54, %v639_v52 }
0x1516   :  { %869 = vtanh.f32 %v649_v55 }
0x1517   :  { %v340_v57 = vpop.permute.xlu0 %339 }
0x151b   :  { %v658_v26 = vpop.permute.xlu0 %657 }
0x151f   :  { %v348_v60 = vpop.permute.xlu0 %347 }
0x1520   :  { %v870_v56 = vpop.eup %869 }
0x1521   :  { %652 = vrot.lane.b32.xlu1 %v870_v56, %s873_s14 }
0x1525   :  { %343 = vrot.lane.b32.xlu1 %v948_v47, %s875_s0 }
0x1529   :  { %661 = vrot.lane.b32.xlu1 %v1012_v11, %s875_s0 }
0x1593   :  { %v653_v58 = vpop.permute.xlu1 %652 }
0x1594   :  { %v655_v59 = vmul.f32 %v868_v49, %v653_v58 }
0x1596   :  { %673 = vrot.lane.b32.xlu0 %v655_v59, %s874_s15  ;;  %665 = vrot.lane.b32.xlu1 %v655_v59, %s873_s14 }
0x1597   :  { %v344_v30 = vpop.permute.xlu1 %343 }
0x1598   :  { %v350_v53 = vsel %vm16_vm0, %v340_v57, %v344_v30 }
0x1599   :  { %v352_v61 = vsel %vm351_vm2, %v350_v53, %v966_v8 }
0x159a   :  { %678 = vrot.lane.b32.xlu1 %v649_v55, %s875_s0  ;;  %v354_v47 = vsel %vm353_vm3, %v352_v61, %v348_v60 }
0x159b   :  { %355 = vst [vmem:[%s1052_s2] sm:$0xff] %v354_v47  ;;  %v662_v62 = vpop.permute.xlu1 %661 }
0x159c   :  { %v668_v63 = vsel %vm16_vm0, %v658_v26, %v662_v62 }
0x159d   :  { %v669_v3 = vsel %vm351_vm2, %v668_v63, %v580_v35 }
0x1608   :  { %v674_v1 = vpop.permute.xlu0 %673  ;;  %v666_v4 = vpop.permute.xlu1 %665 }
0x1609   :  { %676 = vst.msk [vmem:[#allocation2] sm:$0xff] %vm16_vm0, %v674_v1  ;;  %v670_v5 = vsel %vm353_vm3, %v669_v3, %v666_v4 }
0x160a   :  { %711 = vst [vmem:[%s1052_s2 + $0x8] sm:$0xff] %v670_v5 }
0x160c   :  { %v679_v8 = vpop.permute.xlu1 %678 }
0x160d   :  { %681 = vst.msk [vmem:[#allocation3] sm:$0xff] %vm16_vm0, %v679_v8 }

</bundles_post_ra>
